<compile_context>
chip_gen: v5e
topology: v5e:2x2
jax: 0.10.0
libtpu: 0.0.40
codegen_flags: <defaults>
</compile_context>

<pallas_src>
import jax
import jax.numpy as jnp
from jax.experimental import pallas as pl
from jax.experimental.pallas import tpu as pltpu


# ----------------------------- configuration ------------------------------ #
class Config:
    EMBED_SIZE = 32
    HIDDEN_DIM = 128
    DROPOUT = 0.0  # identity at inference time


B, S = 2, 8                # batch, sequence length
E = Config.EMBED_SIZE      # embed size (LayerNorm axis)
HID = Config.HIDDEN_DIM    # FFN intermediate size
BS = B * S                 # flattened token count
LN_EPS = 1e-5              # PyTorch LayerNorm default

_SQRT_2_OVER_PI = 0.7978845608028654


def _gelu_tanh(x):
    # TODO(synk): PyTorch nn.GELU() defaults to the exact erf form; the tanh
    # approximation is used here (max abs diff ~1e-3) since tanh lowers to the
    # EUP transcendental unit.  The pure-JAX reference uses the same formula.
    return 0.5 * x * (1.0 + jnp.tanh(_SQRT_2_OVER_PI * (x + 0.044715 * x * x * x)))


# ------------------------------ Pallas kernel ------------------------------ #
def ffn_kernel(x_ref, w1_ref, b1_ref, w2_ref, b2_ref, gamma_ref, beta_ref, out_ref):
    x = x_ref[...]                                                       # (BS, E)

    # dense1 (weights pre-transposed on host -> x @ W1): (BS, E) @ (E, HID)
    h = jnp.dot(x, w1_ref[...], preferred_element_type=jnp.float32) + b1_ref[...]
    h = _gelu_tanh(h)                                                    # (BS, HID)

    # dense2: (BS, HID) @ (HID, E)
    y = jnp.dot(h, w2_ref[...], preferred_element_type=jnp.float32) + b2_ref[...]

    # TODO(synk): dropout omitted (eval-mode identity, p=Config.DROPOUT).
    y = y + x                                                            # residual

    # LayerNorm over the embed axis
    mu = jnp.mean(y, axis=-1, keepdims=True)
    var = jnp.mean((y - mu) * (y - mu), axis=-1, keepdims=True)
    y_norm = (y - mu) * jax.lax.rsqrt(var + LN_EPS)
    out_ref[...] = y_norm * gamma_ref[...] + beta_ref[...]


# ------------------------------ host wrapper ------------------------------- #
def feed_forward(x, params):
    """x: (B, S, E) float32 -> (B, S, E) float32."""
    # Host-side layout prep (done once, free relative to the kernel):
    #   * flatten (B, S, E) -> (B*S, E) so a single grid step covers the batch
    #   * transpose PyTorch-style (out, in) weights to (in, out)
    #   * make biases / gamma / beta 2D (1, N) rows
    x2d = x.reshape(BS, E)
    w1_t = params["w1"].T              # (E, HID)
    w2_t = params["w2"].T              # (HID, E)
    b1 = params["b1"].reshape(1, HID)
    b2 = params["b2"].reshape(1, E)
    gamma = params["gamma"].reshape(1, E)
    beta = params["beta"].reshape(1, E)

    out2d = pl.pallas_call(
        ffn_kernel,
        out_shape=jax.ShapeDtypeStruct((BS, E), jnp.float32),
        # Single invocation: whole arrays resident in VMEM (total << 1 MiB).
        in_specs=[pl.BlockSpec(memory_space=pltpu.MemorySpace.VMEM)] * 7,
        out_specs=pl.BlockSpec(memory_space=pltpu.MemorySpace.VMEM),
    )(x2d, w1_t, b1, w2_t, b2, gamma, beta)

    return out2d.reshape(B, S, E)


# --------------------------- pure-JAX reference ----------------------------- #
def reference(x, params):
    h = jnp.einsum("bse,he->bsh", x, params["w1"]) + params["b1"]
    h = _gelu_tanh(h)
    y = jnp.einsum("bsh,eh->bse", h, params["w2"]) + params["b2"]
    y = y + x
    mu = jnp.mean(y, axis=-1, keepdims=True)
    var = jnp.mean((y - mu) ** 2, axis=-1, keepdims=True)
    return (y - mu) / jnp.sqrt(var + LN_EPS) * params["gamma"] + params["beta"]


# ---------------------------------- main ----------------------------------- #
if __name__ == "__main__":
    key = jax.random.PRNGKey(0)
    k = jax.random.split(key, 5)

    params = {
        "w1": jax.random.normal(k[0], (HID, E), jnp.float32) * 0.02,   # PyTorch (out, in)
        "b1": jax.random.normal(k[1], (HID,), jnp.float32) * 0.02,
        "w2": jax.random.normal(k[2], (E, HID), jnp.float32) * 0.02,   # PyTorch (out, in)
        "b2": jax.random.normal(k[3], (E,), jnp.float32) * 0.02,
        "gamma": jnp.ones((E,), jnp.float32),
        "beta": jnp.zeros((E,), jnp.float32),
    }
    x = jax.random.normal(k[4], (B, S, E), jnp.float32)

    out = jax.block_until_ready(feed_forward(x, params))
    ref = reference(x, params)

    assert out.shape == (B, S, E)
    assert jnp.allclose(out, ref, rtol=1e-4, atol=1e-4), "mismatch vs reference"

    print("KERNEL_OK")
</pallas_src>

<mosaic_0001>
module attributes {stable_mosaic.version = 11 : i64} {
  func.func @ffn_kernel(%arg0: memref<16x32xf32, #tpu.memory_space<vmem>>, %arg1: memref<32x128xf32, #tpu.memory_space<vmem>>, %arg2: memref<1x128xf32, #tpu.memory_space<vmem>>, %arg3: memref<128x32xf32, #tpu.memory_space<vmem>>, %arg4: memref<1x32xf32, #tpu.memory_space<vmem>>, %arg5: memref<1x32xf32, #tpu.memory_space<vmem>>, %arg6: memref<1x32xf32, #tpu.memory_space<vmem>>, %arg7: memref<16x32xf32, #tpu.memory_space<vmem>>) attributes {dimension_semantics = [], scalar_prefetch = 0 : i64, scratch_operands = 0 : i64, tpu.core_type = #tpu.core_type<tc>} {
    %c0 = arith.constant 0 : index
    %c0_0 = arith.constant 0 : index
    %0 = vector.load %arg0[%c0, %c0_0] : memref<16x32xf32, #tpu.memory_space<vmem>>, vector<16x32xf32>
    %c0_1 = arith.constant 0 : index
    %c0_2 = arith.constant 0 : index
    %1 = vector.load %arg1[%c0_1, %c0_2] : memref<32x128xf32, #tpu.memory_space<vmem>>, vector<32x128xf32>
    %cst = arith.constant dense<0.000000e+00> : vector<16x128xf32>
    %2 = tpu.matmul %0, %1, %cst {dimension_numbers = #tpu.dot_dimension_numbers<[1], [0], [0], [1], [0, 0, 1, 1], [], []>} : vector<16x32xf32>, vector<32x128xf32>, vector<16x128xf32> -> vector<16x128xf32>
    %c0_3 = arith.constant 0 : index
    %c0_4 = arith.constant 0 : index
    %3 = vector.load %arg2[%c0_3, %c0_4] : memref<1x128xf32, #tpu.memory_space<vmem>>, vector<1x128xf32>
    %4 = vector.broadcast %3 : vector<1x128xf32> to vector<16x128xf32>
    %5 = arith.addf %2, %4 : vector<16x128xf32>
    %cst_5 = arith.constant 5.000000e-01 : f32
    %6 = vector.broadcast %cst_5 : f32 to vector<16x128xf32>
    %7 = arith.mulf %6, %5 : vector<16x128xf32>
    %cst_6 = arith.constant 4.471500e-02 : f32
    %8 = vector.broadcast %cst_6 : f32 to vector<16x128xf32>
    %9 = arith.mulf %8, %5 : vector<16x128xf32>
    %10 = arith.mulf %9, %5 : vector<16x128xf32>
    %11 = arith.mulf %10, %5 : vector<16x128xf32>
    %12 = arith.addf %5, %11 : vector<16x128xf32>
    %cst_7 = arith.constant 0.797884583 : f32
    %13 = vector.broadcast %cst_7 : f32 to vector<16x128xf32>
    %14 = arith.mulf %13, %12 : vector<16x128xf32>
    %15 = math.tanh %14 : vector<16x128xf32>
    %cst_8 = arith.constant 1.000000e+00 : f32
    %16 = vector.broadcast %cst_8 : f32 to vector<16x128xf32>
    %17 = arith.addf %16, %15 : vector<16x128xf32>
    %18 = arith.mulf %7, %17 : vector<16x128xf32>
    %c0_9 = arith.constant 0 : index
    %c0_10 = arith.constant 0 : index
    %19 = vector.load %arg3[%c0_9, %c0_10] : memref<128x32xf32, #tpu.memory_space<vmem>>, vector<128x32xf32>
    %cst_11 = arith.constant dense<0.000000e+00> : vector<16x32xf32>
    %20 = tpu.matmul %18, %19, %cst_11 {dimension_numbers = #tpu.dot_dimension_numbers<[1], [0], [0], [1], [0, 0, 1, 1], [], []>} : vector<16x128xf32>, vector<128x32xf32>, vector<16x32xf32> -> vector<16x32xf32>
    %c0_12 = arith.constant 0 : index
    %c0_13 = arith.constant 0 : index
    %21 = vector.load %arg4[%c0_12, %c0_13] : memref<1x32xf32, #tpu.memory_space<vmem>>, vector<1x32xf32>
    %22 = vector.broadcast %21 : vector<1x32xf32> to vector<16x32xf32>
    %23 = arith.addf %20, %22 : vector<16x32xf32>
    %24 = arith.addf %23, %0 : vector<16x32xf32>
    %cst_14 = arith.constant dense<0.000000e+00> : vector<16xf32>
    %25 = vector.multi_reduction <add>, %24, %cst_14 [1] : vector<16x32xf32> to vector<16xf32>
    %26 = vector.shape_cast %25 : vector<16xf32> to vector<16x1xf32>
    %cst_15 = arith.constant 3.200000e+01 : f32
    %27 = vector.broadcast %cst_15 : f32 to vector<16x1xf32>
    %28 = arith.divf %26, %27 : vector<16x1xf32>
    %29 = vector.broadcast %28 : vector<16x1xf32> to vector<16x32xf32>
    %30 = arith.subf %24, %29 : vector<16x32xf32>
    %31 = vector.broadcast %28 : vector<16x1xf32> to vector<16x32xf32>
    %32 = arith.subf %24, %31 : vector<16x32xf32>
    %33 = arith.mulf %30, %32 : vector<16x32xf32>
    %cst_16 = arith.constant dense<0.000000e+00> : vector<16xf32>
    %34 = vector.multi_reduction <add>, %33, %cst_16 [1] : vector<16x32xf32> to vector<16xf32>
    %35 = vector.shape_cast %34 : vector<16xf32> to vector<16x1xf32>
    %cst_17 = arith.constant 3.200000e+01 : f32
    %36 = vector.broadcast %cst_17 : f32 to vector<16x1xf32>
    %37 = arith.divf %35, %36 : vector<16x1xf32>
    %38 = vector.broadcast %28 : vector<16x1xf32> to vector<16x32xf32>
    %39 = arith.subf %24, %38 : vector<16x32xf32>
    %cst_18 = arith.constant 9.99999974E-6 : f32
    %40 = vector.broadcast %cst_18 : f32 to vector<16x1xf32>
    %41 = arith.addf %37, %40 : vector<16x1xf32>
    %42 = math.rsqrt %41 : vector<16x1xf32>
    %43 = vector.broadcast %42 : vector<16x1xf32> to vector<16x32xf32>
    %44 = arith.mulf %39, %43 : vector<16x32xf32>
    %c0_19 = arith.constant 0 : index
    %c0_20 = arith.constant 0 : index
    %45 = vector.load %arg5[%c0_19, %c0_20] : memref<1x32xf32, #tpu.memory_space<vmem>>, vector<1x32xf32>
    %46 = vector.broadcast %45 : vector<1x32xf32> to vector<16x32xf32>
    %47 = arith.mulf %44, %46 : vector<16x32xf32>
    %c0_21 = arith.constant 0 : index
    %c0_22 = arith.constant 0 : index
    %48 = vector.load %arg6[%c0_21, %c0_22] : memref<1x32xf32, #tpu.memory_space<vmem>>, vector<1x32xf32>
    %49 = vector.broadcast %48 : vector<1x32xf32> to vector<16x32xf32>
    %50 = arith.addf %47, %49 : vector<16x32xf32>
    %c0_23 = arith.constant 0 : index
    %c0_24 = arith.constant 0 : index
    %51 = vector.load %arg7[%c0_23, %c0_24] : memref<16x32xf32, #tpu.memory_space<vmem>>, vector<16x32xf32>
    tpu.vector_store %arg7[%c0_23, %c0_24], %50 {strides = array<i32>} : memref<16x32xf32, #tpu.memory_space<vmem>>, vector<16x32xf32>,
    return
  }
}

</mosaic_0001>

<bundles_post_ra>
// kernel: tpu_custom_call.1
= control target key start
LH: loop header
LB: loop body
LE: loop exit
PB: predicated region body
PF: predicated region fallthrough
CT: control target
= control target key end

     0   :  { %s416_s0 = inlined_call_operand.vmem [shape: f32[16,32], index: 0, kind: input, shape index: {}]   ;;  %s417_s1 = inlined_call_operand.vmem [shape: f32[32,128], index: 1, kind: input, shape index: {}]   ;;  %s418_s2 = inlined_call_operand.vmem [shape: f32[1,128], index: 2, kind: input, shape index: {}]   ;;  %s419_s3 = inlined_call_operand.vmem [shape: f32[128,32], index: 3, kind: input, shape index: {}]   ;;  %s420_s4 = inlined_call_operand.vmem [shape: f32[1,32], index: 4, kind: input, shape index: {}]   ;;  %s421_s5 = inlined_call_operand.vmem [shape: f32[1,32], index: 5, kind: input, shape index: {}]   ;;  %s422_s6 = inlined_call_operand.vmem [shape: f32[1,32], index: 6, kind: input, shape index: {}]   ;;  %s423_s7 = inlined_call_operand.hbm [shape: f32[16,32], index: 7, kind: output, shape index: {}]  }
   0x1   :  { %v32_v0 = vld [vmem:[%s417_s1 + $0x18] sm:$0xff]  ;;  %v31_v1 = vld [vmem:[%s417_s1 + $0x10] sm:$0xff]  ;;  %v30_v2 = vld [vmem:[%s417_s1 + $0x8] sm:$0xff] }
   0x2   :  { %56 = vmatpush.msra.mxu0 %v32_v0  ;;  %v100_v3 = vld [vmem:[%s419_s3 + $0x78] sm:$0xff]  ;;  %v99_v4 = vld [vmem:[%s419_s3 + $0x70] sm:$0xff]  ;;  %v29_v5 = vld [vmem:[%s417_s1] sm:$0xff] }
   0x3   :  { %105 = vmatpush.msra.mxu1 %v100_v3  ;;  %v98_v6 = vld [vmem:[%s419_s3 + $0x68] sm:$0xff]  ;;  %215 = vmatpush.msra.mxu2 %v100_v3 }
   0x4   :  { %57 = vmatpush.msra.mxu0 %v31_v1 }
   0x5   :  { %12 = vsyncpa [#allocation3], 0  ;;  %v343_v7 = vld [vmem:[%s416_s0] sm:$0xff]  ;;  %vm37_vm0 = vcmask 261120   ;;  %106 = vmatpush.msra.mxu1 %v99_v4  ;;  %216 = vmatpush.msra.mxu2 %v99_v4  ;;  %v353_v9 = vld [vmem:[%s416_s0 + $0x8] sm:$0xff]  ;;  %v275_v54 = vmov 32.0  }
   0x6   :  { %58 = vmatpush.msra.mxu0 %v30_v2  ;;  %v97_v8 = vld [vmem:[%s419_s3 + $0x60] sm:$0xff]  ;;  %v96_v10 = vld [vmem:[%s419_s3 + $0x58] sm:$0xff]  ;;  %v95_v11 = vld [vmem:[%s419_s3 + $0x50] sm:$0xff]  ;;  %s277_s26 = smov 128   ;;  %s278_s27 = smov 8  }
   0x7   :  { %107 = vmatpush.msra.mxu1 %v98_v6  ;;  %217 = vmatpush.msra.mxu2 %v98_v6  ;;  %v94_v12 = vld [vmem:[%s419_s3 + $0x48] sm:$0xff]  ;;  %v93_v13 = vld [vmem:[%s419_s3 + $0x40] sm:$0xff]  ;;  %v92_v14 = vld [vmem:[%s419_s3 + $0x38] sm:$0xff] }
   0x8   :  { %59 = vmatpush.msra.mxu0 %v29_v5  ;;  %v91_v15 = vld [vmem:[%s419_s3 + $0x30] sm:$0xff]  ;;  %v90_v16 = vld [vmem:[%s419_s3 + $0x28] sm:$0xff]  ;;  %v89_v17 = vld [vmem:[%s419_s3 + $0x20] sm:$0xff] }
   0x9   :  { %213 = vmatmul.msk.f32.vlgmr.msra.gmra.mxu0 %vm37_vm0, %v343_v7  ;;  %108 = vmatpush.msra.mxu1 %v97_v8  ;;  %v88_v18 = vld [vmem:[%s419_s3 + $0x18] sm:$0xff]  ;;  %v87_v19 = vld [vmem:[%s419_s3 + $0x10] sm:$0xff]  ;;  %v86_v20 = vld [vmem:[%s419_s3 + $0x8] sm:$0xff] }
   0xa   :  { %218 = vmatpush.msra.mxu2 %v97_v8  ;;  %v85_v21 = vld [vmem:[%s419_s3] sm:$0xff] }
   0xb   :  { %109 = vmatpush.msra.mxu1 %v96_v10  ;;  %v235_v22 = vld [vmem:[%s418_s2] ss:$0 sm:$0xff] }
   0xc   :  { %219 = vmatpush.msra.mxu2 %v96_v10  ;;  %v236_v45 = vld [vmem:[%s420_s4] ss:$0 sm:$0xff] }
   0xd   :  { %110 = vmatpush.msra.mxu1 %v95_v11 }
   0xe   :  { %220 = vmatpush.msra.mxu2 %v95_v11 }
   0xf   :  { %111 = vmatpush.msra.mxu1 %v94_v12 }
  0x10   :  { %221 = vmatpush.msra.mxu2 %v94_v12 }
  0x11   :  { %214 = vmatmul.msk.f32.gmra.mxu0 %vm37_vm0, %v353_v9  ;;  %112 = vmatpush.msra.mxu1 %v93_v13 }
  0x12   :  { %222 = vmatpush.msra.mxu2 %v93_v13 }
  0x13   :  { %113 = vmatpush.msra.mxu1 %v92_v14 }
  0x14   :  { %223 = vmatpush.msra.mxu2 %v92_v14 }
  0x15   :  { %114 = vmatpush.msra.mxu1 %v91_v15 }
  0x16   :  { %224 = vmatpush.msra.mxu2 %v91_v15 }
  0x17   :  { %115 = vmatpush.msra.mxu1 %v90_v16 }
  0x18   :  { %225 = vmatpush.msra.mxu2 %v90_v16 }
  0x19   :  { %116 = vmatpush.msra.mxu1 %v89_v17 }
  0x1a   :  { %226 = vmatpush.msra.mxu2 %v89_v17 }
  0x1b   :  { %117 = vmatpush.msra.mxu1 %v88_v18 }
  0x1c   :  { %227 = vmatpush.msra.mxu2 %v88_v18 }
  0x1d   :  { %118 = vmatpush.msra.mxu1 %v87_v19 }
  0x1e   :  { %228 = vmatpush.msra.mxu2 %v87_v19  ;;  %v237_v19 = vld [vmem:[%s421_s5] ss:$0 sm:$0xff]  ;;  %s276_s5 = smov [#allocation2]  }
  0x1f   :  { %119 = vmatpush.msra.mxu1 %v86_v20  ;;  %s199_s24 = sshll.u32 %s276_s5, 4  ;;  %s200_s24 = int_to_ptr.vmem [resolvable:$true] %s199_s24 }
  0x20   :  { %229 = vmatpush.msra.mxu2 %v86_v20 }
  0x21   :  { %120 = vmatpush.msra.mxu1 %v85_v21 }
  0x22   :  { %230 = vmatpush.msra.mxu2 %v85_v21 }
  0x86   :  { %v61_v23 = vpop.f32.mrf.mxu0 }
  0x87   :  { %v62_v24 = vadd.f32 %v235_v22, %v61_v23 }
  0x89   :  { %v69_v25 = vmul.f32 0.044715, %v62_v24  ;;  %v67_v38 = vmul.f32 0.5, %v62_v24 }
  0x8b   :  { %v71_v26 = vmul.f32 %v69_v25, %v62_v24 }
  0x8d   :  { %v73_v27 = vmul.f32 %v71_v26, %v62_v24 }
  0x8e   :  { %v64_v28 = vpop.f32.mrf.mxu0 }
  0x8f   :  { %v65_v29 = vadd.f32 %v235_v22, %v64_v28  ;;  %v75_v30 = vadd.f32 %v73_v27, %v62_v24  ;;  %v238_v22 = vld [vmem:[%s422_s6] ss:$0 sm:$0xff]  ;;  %s201_s6 = sshll.u32 %s423_s7, 4  ;;  %s202_s6 = int_to_ptr.hbm [resolvable:$true] %s201_s6 }
  0x91   :  { %v77_v31 = vmul.f32 0.7978846, %v75_v30  ;;  %v70_v32 = vmul.f32 0.044715, %v65_v29  ;;  %v68_v42 = vmul.f32 0.5, %v65_v29 }
  0x93   :  { %239 = vtanh.f32 %v77_v31  ;;  %v72_v33 = vmul.f32 %v70_v32, %v65_v29 }
  0x95   :  { %v74_v34 = vmul.f32 %v72_v33, %v65_v29 }
  0x97   :  { %v76_v35 = vadd.f32 %v74_v34, %v65_v29 }
  0x99   :  { %v240_v36 = vpop.eup %239  ;;  %v78_v37 = vmul.f32 0.7978846, %v76_v35 }
  0x9a   :  { %v81_v39 = vadd.f32 1.0, %v240_v36 }
  0x9b   :  { %241 = vtanh.f32 %v78_v37 }
  0x9c   :  { %v83_v40 = vmul.f32 %v81_v39, %v67_v38  ;;  %243 = vrcp.f32 %v275_v54 }
  0x9e   :  { %121 = vmatmul.f32.vlgmr.msra.gmra.mxu1 %v83_v40 }
  0xa1   :  { %v242_v41 = vpop.eup %241 }
  0xa2   :  { %v82_v43 = vadd.f32 1.0, %v242_v41  ;;  %v244_v55 = vpop.eup %243 }
  0xa3   :  { %v137_v56 = vmul.f32 32.0, %v244_v55  ;;  %vm141_vm1 = vweird.f32 %v244_v55 }
  0xa4   :  { %v84_v44 = vmul.f32 %v82_v43, %v68_v42 }
  0xa5   :  { %v138_v57 = vsub.f32 1.0, %v137_v56 }
  0xa6   :  { %124 = vmatmul.f32.vlgmr.msra.gmra.mxu2 %v84_v44 }
  0xa7   :  { %v139_v58 = vmul.f32 %v244_v55, %v138_v57 }
  0xa9   :  { %v140_v59 = vadd.f32 %v244_v55, %v139_v58 }
  0xab   :  { %v142_v60 = vsel %vm141_vm1, %v244_v55, %v140_v59 }
 0x11b   :  { %v122_v46 = vpop.f32.mrf.mxu1 }
 0x11c   :  { %v123_v47 = vadd.f32 %v236_v45, %v122_v46 }
 0x11e   :  { %v128_v48 = vadd.f32 %v123_v47, %v343_v7 }
 0x120   :  { %v130_v49 = vsel %vm37_vm0, %v128_v48, 0.0 }
 0x121   :  { %131 = vadd.xlane.f32.xlu0 %v130_v49 }
 0x129   :  { %v125_v50 = vpop.f32.mrf.mxu2 }
 0x12a   :  { %v126_v51 = vadd.f32 %v236_v45, %v125_v50 }
 0x12c   :  { %v129_v52 = vadd.f32 %v126_v51, %v353_v9 }
 0x12e   :  { %v133_v53 = vsel %vm37_vm0, %v129_v52, 0.0 }
 0x12f   :  { %134 = vadd.xlane.f32.xlu0 %v133_v53 }
 0x194   :  { %v132_v61 = vpop.xlane.xlu0 %131 }
 0x195   :  { %v143_v62 = vmul.f32 %v142_v60, %v132_v61 }
 0x197   :  { %v145_v63 = vsub.f32 %v128_v48, %v143_v62 }
 0x199   :  { %v147_v0 = vmul.f32 %v145_v63, %v145_v63 }
 0x19b   :  { %v149_v1 = vsel %vm37_vm0, %v147_v0, 0.0 }
 0x19c   :  { %150 = vadd.xlane.f32.xlu1 %v149_v1 }
 0x1a2   :  { %v135_v2 = vpop.xlane.xlu0 %134 }
 0x1a3   :  { %v144_v3 = vmul.f32 %v142_v60, %v135_v2 }
 0x1a5   :  { %v146_v4 = vsub.f32 %v129_v52, %v144_v3 }
 0x1a7   :  { %v148_v5 = vmul.f32 %v146_v4, %v146_v4 }
 0x1a9   :  { %v152_v6 = vsel %vm37_vm0, %v148_v5, 0.0 }
 0x1aa   :  { %153 = vadd.xlane.f32.xlu1 %v152_v6 }
 0x20f   :  { %v151_v7 = vpop.xlane.xlu1 %150 }
 0x210   :  { %v155_v8 = vmul.f32 %v151_v7, %v142_v60 }
 0x212   :  { %v157_v9 = vadd.f32 1e-05, %v155_v8 }
 0x214   :  { %245 = vrsqrt.f32 %v157_v9  ;;  %vm165_vm3 = vweird.f32 %v157_v9 }
 0x21a   :  { %v246_v10 = vpop.eup %245 }
 0x21b   :  { %v160_v11 = vmul.f32 %v246_v10, %v157_v9  ;;  %vm166_vm2 = vweird.f32 %v246_v10 }
 0x21c   :  { %vm167_vm4 = vmor %vm165_vm3, %vm166_vm2 }
 0x21d   :  { %v161_v12 = vmul.f32 %v246_v10, %v160_v11  ;;  %v154_v13 = vpop.xlane.xlu1 %153 }
 0x21e   :  { %v156_v14 = vmul.f32 %v154_v13, %v142_v60 }
 0x21f   :  { %v162_v15 = vmul.f32 0.5, %v161_v12 }
 0x220   :  { %v158_v16 = vadd.f32 1e-05, %v156_v14 }
 0x221   :  { %v163_v17 = vsub.f32 1.5, %v162_v15 }
 0x222   :  { %247 = vrsqrt.f32 %v158_v16  ;;  %vm175_vm6 = vweird.f32 %v158_v16 }
 0x223   :  { %v164_v18 = vmul.f32 %v246_v10, %v163_v17 }
 0x225   :  { %v168_v20 = vsel %vm167_vm4, %v246_v10, %v164_v18 }
 0x226   :  { %v179_v21 = vmul.f32 %v168_v20, %v145_v63 }
 0x228   :  { %v248_v23 = vpop.eup %247  ;;  %v185_v24 = vmul.f32 %v237_v19, %v179_v21 }
 0x229   :  { %v170_v25 = vmul.f32 %v248_v23, %v158_v16  ;;  %vm176_vm5 = vweird.f32 %v248_v23 }
 0x22a   :  { %v191_v26 = vadd.f32 %v238_v22, %v185_v24  ;;  %vm177_vm7 = vmor %vm175_vm6, %vm176_vm5 }
 0x22b   :  { %v171_v27 = vmul.f32 %v248_v23, %v170_v25 }
 0x22c   :  { %193 = vst.msk [vmem:[#allocation2] sm:$0xff] %vm37_vm0, %v191_v26 }
 0x22d   :  { %v172_v28 = vmul.f32 0.5, %v171_v27 }
 0x22f   :  { %v173_v29 = vsub.f32 1.5, %v172_v28 }
 0x231   :  { %v174_v30 = vmul.f32 %v248_v23, %v173_v29 }
 0x233   :  { %v178_v31 = vsel %vm177_vm7, %v248_v23, %v174_v30 }
 0x234   :  { %v180_v32 = vmul.f32 %v178_v31, %v146_v4 }
 0x236   :  { %v186_v33 = vmul.f32 %v237_v19, %v180_v32 }
 0x238   :  { %v192_v34 = vadd.f32 %v238_v22, %v186_v33 }
 0x23a   :  { %194 = vst.msk [vmem:[#allocation2 + $0x8] sm:$0xff] %vm37_vm0, %v192_v34 }
 0x23b   :  { %207 = dma.vmem_to_hbm [thread:$0]  %s200_s24, 256, %s202_s6, [#allocation3], %s277_s26, %s277_s26, %s278_s27  }
 0x23c   :  { %273 = dma.done.wait [#allocation3], 256  }
 0x23d   :  { %274 = vsyncadd [#allocation3], 4294967040 }
 0x23e   :  { %212 = vsyncpa [#allocation3], 1 }

</bundles_post_ra>
